<compile_context>
chip_gen: v7x
topology: tpu7x:2x2x1
jax: 0.10.0
libtpu: 0.0.40
codegen_flags: <defaults>
</compile_context>

<pallas_src>
import functools

import numpy as np
import jax
import jax.numpy as jnp
from jax.experimental import pallas as pl
from jax.experimental.pallas import tpu as pltpu  # noqa: F401  (not needed at this size)


def _fused_forward_kernel(p_ref, d_ref, o_ref, *, n_pad, inv_count):
    """Fused (conv1 o conv2)+4 -> clamp(mean, mean+3) -> *1/3.

    p_ref: (8, 5) f32  packed params: [ W_eff (3 cols) | w_border (1) | b_eff (1) ]
    d_ref: (4, Mp) f32 rows 0..2 = zero-padded input channels (flattened NCHW),
                       row 3    = border / lane-pad indicator (1.0 where the input
                                  rows are structurally zero and the true value
                                  must be b2 + 4 = b_eff + w_border)
    o_ref: (8, Mp) f32
    """
    p = p_ref[...]                         # (8, 5) — single vreg
    d = d_ref[...]                         # (4, Mp)
    n_terms = d.shape[0]                   # 4: three channels + border row

    b_eff = p[:, n_terms:n_terms + 1]      # (8, 1)

    # Composed conv: 4 broadcast FMAs over the lane-dense (8, Mp) tile.
    t3 = b_eff
    for k in range(n_terms):
        t3 = t3 + p[:, k:k + 1] * d[k:k + 1, :]

    # Lane-pad columns hold (b2 + 4) per channel = b_eff + w_border; subtract
    # their known contribution so the mean uses the exact valid element count.
    pad_col_sum = jnp.sum(p[:, n_terms - 1:n_terms] + b_eff)
    mean = (jnp.sum(t3) - n_pad * pad_col_sum) * inv_count

    o_ref[...] = jnp.clip(t3, mean, mean + 3.0) * (1.0 / 3.0)


@jax.jit
def model_forward(x_nchw, w1, b1, w2, b2):
    N, Cin, H, W = x_nchw.shape
    Cout = w1.shape[0]
    H2, W2 = H + 4, W + 4                       # padding=1 applied by both 1x1 convs
    M = N * H2 * W2                             # valid (unpadded) lane count
    Mp = ((M + 127) // 128) * 128               # lane-dense, 128-aligned
    n_pad = Mp - M

    prec = jax.lax.Precision.HIGHEST
    w1_2d = w1[:, :, 0, 0].astype(jnp.float32)  # (8, 3)
    w2_2d = w2[:, :, 0, 0].astype(jnp.float32)  # (8, 8)
    b1_c = b1.astype(jnp.float32).reshape(Cout, 1)
    b2_c = b2.astype(jnp.float32).reshape(Cout, 1)

    # Trace-time composition of the two 1x1 convs (exact for this dataflow).
    w_eff = jnp.dot(w2_2d, w1_2d, precision=prec)       # (8, 3)
    w2b1 = jnp.dot(w2_2d, b1_c, precision=prec)          # (8, 1)
    b_eff = w2b1 + b2_c + 4.0                            # (8, 1)
    params = jnp.concatenate([w_eff, -w2b1, b_eff], axis=1)   # (8, 5) — one DMA

    # Compose both padding=1 borders into one spatial zero-pad of 2; flatten to
    # (Cin, M) with channels on sublanes / spatial on lanes, then lane-pad to Mp.
    xp = jnp.pad(x_nchw.astype(jnp.float32), ((0, 0), (0, 0), (2, 2), (2, 2)))
    x_flat = jnp.transpose(xp, (1, 0, 2, 3)).reshape(Cin, M)
    x_flat = jnp.pad(x_flat, ((0, 0), (0, n_pad)))

    # Trace-time constant: 1.0 on the outermost 1-pixel frame of each image
    # (where the true value is bias-only b2+4) and on the lane-pad columns.
    pos = np.arange(M) % (H2 * W2)
    r, c = pos // W2, pos % W2
    border = ((r == 0) | (r == H2 - 1) | (c == 0) | (c == W2 - 1)).astype(np.float32)
    border = np.concatenate([border, np.ones(n_pad, np.float32)])
    data = jnp.concatenate([x_flat, jnp.asarray(border.reshape(1, Mp))], axis=0)

    kernel = functools.partial(
        _fused_forward_kernel,
        n_pad=float(n_pad),
        inv_count=1.0 / float(Cout * M),
    )

    out_flat = pl.pallas_call(
        kernel,
        out_shape=jax.ShapeDtypeStruct((Cout, Mp), jnp.float32),
        in_specs=[
            pl.BlockSpec((Cout, Cin + 2), lambda: (0, 0)),     # packed params (8,5)
            pl.BlockSpec((Cin + 1, Mp), lambda: (0, 0)),       # packed data   (4,Mp)
        ],
        out_specs=pl.BlockSpec((Cout, Mp), lambda: (0, 0)),
    )(params, data)

    # Drop lane padding; (8, N*H2*W2) is flattened (C, N, H2, W2) -> NCHW.
    return jnp.transpose(out_flat[:, :M].reshape(Cout, N, H2, W2), (1, 0, 2, 3))


def _reference_forward(x, w1, b1, w2, b2):
    prec = jax.lax.Precision.HIGHEST
    t1 = jax.lax.conv_general_dilated(
        x, w1, (1, 1), ((1, 1), (1, 1)), precision=prec) + b1.reshape(1, -1, 1, 1)
    t3 = jax.lax.conv_general_dilated(
        t1, w2, (1, 1), ((1, 1), (1, 1)), precision=prec) + b2.reshape(1, -1, 1, 1) + 4.0
    m = jnp.mean(t3)
    return jnp.clip(t3, m, m + 3.0) / 3.0


if __name__ == "__main__":
    key = jax.random.PRNGKey(0)
    kx, kw1, kb1, kw2, kb2 = jax.random.split(key, 5)

    # Small shapes consistent with the module (N=1, 3 input channels).
    x = jax.random.normal(kx, (1, 3, 16, 16), dtype=jnp.float32)
    w1 = jax.random.normal(kw1, (8, 3, 1, 1), dtype=jnp.float32) * 0.2
    b1 = jax.random.normal(kb1, (8,), dtype=jnp.float32) * 0.1
    w2 = jax.random.normal(kw2, (8, 8, 1, 1), dtype=jnp.float32) * 0.2
    b2 = jax.random.normal(kb2, (8,), dtype=jnp.float32) * 0.1

    out = model_forward(x, w1, b1, w2, b2)
    jax.block_until_ready(out)
    assert out.shape == (1, 8, 20, 20), out.shape   # 16 -> 18 -> 20 (pad=1 twice)

    ref = _reference_forward(x, w1, b1, w2, b2)
    err = float(jnp.max(jnp.abs(out - ref)))
    assert jnp.allclose(out, ref, atol=1e-4, rtol=1e-4), err

    print("KERNEL_OK")
</pallas_src>

<mosaic_0001>
module attributes {stable_mosaic.version = 11 : i64} {
  func.func @_fused_forward_kernel(%arg0: memref<8x5xf32, #tpu.memory_space<vmem>>, %arg1: memref<4x512xf32, #tpu.memory_space<vmem>>, %arg2: memref<8x512xf32, #tpu.memory_space<vmem>>) attributes {dimension_semantics = [], scalar_prefetch = 0 : i64, scratch_operands = 0 : i64, tpu.core_type = #tpu.core_type<tc>} {
    %c0 = arith.constant 0 : index
    %c0_0 = arith.constant 0 : index
    %0 = vector.load %arg0[%c0, %c0_0] : memref<8x5xf32, #tpu.memory_space<vmem>>, vector<8x5xf32>
    %c0_1 = arith.constant 0 : index
    %c0_2 = arith.constant 0 : index
    %1 = vector.load %arg1[%c0_1, %c0_2] : memref<4x512xf32, #tpu.memory_space<vmem>>, vector<4x512xf32>
    %2 = vector.extract_strided_slice %0 {offsets = [0, 4], sizes = [8, 1], strides = [1, 1]} : vector<8x5xf32> to vector<8x1xf32>
    %3 = vector.extract_strided_slice %0 {offsets = [0, 0], sizes = [8, 1], strides = [1, 1]} : vector<8x5xf32> to vector<8x1xf32>
    %4 = vector.extract_strided_slice %1 {offsets = [0, 0], sizes = [1, 512], strides = [1, 1]} : vector<4x512xf32> to vector<1x512xf32>
    %5 = vector.broadcast %3 : vector<8x1xf32> to vector<8x512xf32>
    %6 = vector.broadcast %4 : vector<1x512xf32> to vector<8x512xf32>
    %7 = arith.mulf %5, %6 : vector<8x512xf32>
    %8 = vector.broadcast %2 : vector<8x1xf32> to vector<8x512xf32>
    %9 = arith.addf %8, %7 : vector<8x512xf32>
    %10 = vector.extract_strided_slice %0 {offsets = [0, 1], sizes = [8, 1], strides = [1, 1]} : vector<8x5xf32> to vector<8x1xf32>
    %11 = vector.extract_strided_slice %1 {offsets = [1, 0], sizes = [1, 512], strides = [1, 1]} : vector<4x512xf32> to vector<1x512xf32>
    %12 = vector.broadcast %10 : vector<8x1xf32> to vector<8x512xf32>
    %13 = vector.broadcast %11 : vector<1x512xf32> to vector<8x512xf32>
    %14 = arith.mulf %12, %13 : vector<8x512xf32>
    %15 = arith.addf %9, %14 : vector<8x512xf32>
    %16 = vector.extract_strided_slice %0 {offsets = [0, 2], sizes = [8, 1], strides = [1, 1]} : vector<8x5xf32> to vector<8x1xf32>
    %17 = vector.extract_strided_slice %1 {offsets = [2, 0], sizes = [1, 512], strides = [1, 1]} : vector<4x512xf32> to vector<1x512xf32>
    %18 = vector.broadcast %16 : vector<8x1xf32> to vector<8x512xf32>
    %19 = vector.broadcast %17 : vector<1x512xf32> to vector<8x512xf32>
    %20 = arith.mulf %18, %19 : vector<8x512xf32>
    %21 = arith.addf %15, %20 : vector<8x512xf32>
    %22 = vector.extract_strided_slice %0 {offsets = [0, 3], sizes = [8, 1], strides = [1, 1]} : vector<8x5xf32> to vector<8x1xf32>
    %23 = vector.extract_strided_slice %1 {offsets = [3, 0], sizes = [1, 512], strides = [1, 1]} : vector<4x512xf32> to vector<1x512xf32>
    %24 = vector.broadcast %22 : vector<8x1xf32> to vector<8x512xf32>
    %25 = vector.broadcast %23 : vector<1x512xf32> to vector<8x512xf32>
    %26 = arith.mulf %24, %25 : vector<8x512xf32>
    %27 = arith.addf %21, %26 : vector<8x512xf32>
    %28 = vector.extract_strided_slice %0 {offsets = [0, 3], sizes = [8, 1], strides = [1, 1]} : vector<8x5xf32> to vector<8x1xf32>
    %29 = arith.addf %28, %2 : vector<8x1xf32>
    %30 = vector.shape_cast %29 : vector<8x1xf32> to vector<1x8x1xf32>
    %cst = arith.constant dense<0.000000e+00> : vector<1xf32>
    %31 = vector.multi_reduction <add>, %30, %cst [1, 2] : vector<1x8x1xf32> to vector<1xf32>
    %32 = vector.shape_cast %31 : vector<1xf32> to vector<1x1x1xf32>
    %33 = vector.extract %32[0, 0, 0] : f32 from vector<1x1x1xf32>
    %34 = vector.shape_cast %27 : vector<8x512xf32> to vector<1x8x512xf32>
    %cst_3 = arith.constant dense<0.000000e+00> : vector<1xf32>
    %35 = vector.multi_reduction <add>, %34, %cst_3 [1, 2] : vector<1x8x512xf32> to vector<1xf32>
    %36 = vector.shape_cast %35 : vector<1xf32> to vector<1x1x1xf32>
    %37 = vector.extract %36[0, 0, 0] : f32 from vector<1x1x1xf32>
    %cst_4 = arith.constant 1.120000e+02 : f32
    %38 = arith.mulf %cst_4, %33 : f32
    %39 = arith.subf %37, %38 : f32
    %cst_5 = arith.constant 3.125000e-04 : f32
    %40 = arith.mulf %39, %cst_5 : f32
    %cst_6 = arith.constant 3.000000e+00 : f32
    %41 = arith.addf %40, %cst_6 : f32
    %42 = vector.broadcast %40 : f32 to vector<8x512xf32>
    %43 = arith.maximumf %42, %27 : vector<8x512xf32>
    %44 = vector.broadcast %41 : f32 to vector<8x512xf32>
    %45 = arith.minimumf %44, %43 : vector<8x512xf32>
    %cst_7 = arith.constant 0.333333343 : f32
    %46 = vector.broadcast %cst_7 : f32 to vector<8x512xf32>
    %47 = arith.mulf %45, %46 : vector<8x512xf32>
    %c0_8 = arith.constant 0 : index
    %c0_9 = arith.constant 0 : index
    %48 = vector.load %arg2[%c0_8, %c0_9] : memref<8x512xf32, #tpu.memory_space<vmem>>, vector<8x512xf32>
    tpu.vector_store %arg2[%c0_8, %c0_9], %47 {strides = array<i32>} : memref<8x512xf32, #tpu.memory_space<vmem>>, vector<8x512xf32>,
    return
  }
}

</mosaic_0001>

<bundles_post_ra>
// kernel: model_forward.1
= control target key start
LH: loop header
LB: loop body
LE: loop exit
PB: predicated region body
PF: predicated region fallthrough
CT: control target
= control target key end

     0   :  { %v286_v1 = vmov 4   ;;  %v287_v2 = vmov 0   ;;  %s288_s11 = smov 127   ;;  %v289_v3 = vmov 1   ;;  %v290_v4 = vmov 3   ;;  %s345_s0 = inlined_call_operand.vmem [shape: f32[8,5], index: 0, kind: input, shape index: {}]   ;;  %s346_s1 = inlined_call_operand.vmem [shape: f32[4,512], index: 1, kind: input, shape index: {}]   ;;  %s347_s2 = inlined_call_operand.vmem [shape: f32[8,512], index: 2, kind: output, shape index: {}]  }
   0x1   :  { %v11_v0 = vld [vmem:[%s345_s0] sm:$0xff]  ;;  %282 = vset.pattern.permute.xlu1 %v286_v1  ;;  %281 = vset.pattern.permute.xlu0 %v287_v2  ;;  %v291_v5 = vmov 2   ;;  %v21_v6 = vlaneseq  ;;  %s292_s0 = smov 125   ;;  %v13_v13 = vld [vmem:[%s346_s1 + $0x8] sm:$0xff]  ;;  %vm221_vm0 = vcmask 7168  }
   0x2   :  { %213 = vrot.lane.b32.xlu0 %v11_v0, %s288_s11  ;;  %62 = vperm.xlu1 %282, %v11_v0   ;;  %v12_v12 = vld [vmem:[%s346_s1] sm:$0xff] }
   0x3   :  { %v22_v9 = vshrl.u32 %v21_v6, 7 }
   0x5   :  { %v23_v10 = vsub.s32 0, %v22_v9  ;;  %v27_v11 = vsub.s32 4, %v22_v9  ;;  %v75_v14 = vsub.s32 1, %v22_v9  ;;  %v79_v15 = vsub.s32 5, %v22_v9 }
   0x6   :  { %283 = vset.pattern.permute.xlu1 %v289_v3  ;;  %16 = vperm.xlu0 %281, %v11_v0   ;;  %v317_v16 = vsub.s32 2, %v22_v9  ;;  %v127_v17 = vsub.s32 6, %v22_v9  ;;  %v319_v18 = vsub.s32 3, %v22_v9  ;;  %v175_v19 = vsub.s32 7, %v22_v9 }
   0x7   :  { %70 = vperm.xlu1 %283, %v11_v0   ;;  %v24_v20 = vrot.slane %v12_v12, %v23_v10  ;;  %v28_v21 = vrot.slane %v12_v12, %v27_v11  ;;  %v32_v22 = vrot.slane %v13_v13, %v23_v10  ;;  %v36_v23 = vrot.slane %v13_v13, %v27_v11 }
   0x8   :  { %v76_v24 = vrot.slane %v12_v12, %v75_v14  ;;  %v80_v25 = vrot.slane %v12_v12, %v79_v15  ;;  %v84_v26 = vrot.slane %v13_v13, %v75_v14  ;;  %v88_v27 = vrot.slane %v13_v13, %v79_v15 }
   0x9   :  { %v124_v28 = vrot.slane %v12_v12, %v317_v16  ;;  %v128_v29 = vrot.slane %v12_v12, %v127_v17  ;;  %v132_v30 = vrot.slane %v13_v13, %v317_v16  ;;  %v136_v31 = vrot.slane %v13_v13, %v127_v17 }
   0xa   :  { %285 = vset.pattern.permute.xlu0 %v290_v4  ;;  %v172_v33 = vrot.slane %v12_v12, %v319_v18  ;;  %v176_v34 = vrot.slane %v12_v12, %v175_v19  ;;  %v180_v35 = vrot.slane %v13_v13, %v319_v18  ;;  %v44_v36 = vrot.slane %v24_v20, %v23_v10 }
   0xb   :  { %284 = vset.pattern.permute.xlu1 %v291_v5  ;;  %166 = vperm.xlu0 %285, %v11_v0   ;;  %v48_v37 = vrot.slane %v28_v21, %v23_v10  ;;  %v52_v38 = vrot.slane %v32_v22, %v23_v10  ;;  %v56_v39 = vrot.slane %v36_v23, %v23_v10 }
   0xc   :  { %118 = vperm.xlu1 %284, %v11_v0   ;;  %v96_v40 = vrot.slane %v76_v24, %v75_v14  ;;  %v100_v41 = vrot.slane %v80_v25, %v75_v14  ;;  %v104_v42 = vrot.slane %v84_v26, %v75_v14  ;;  %v108_v43 = vrot.slane %v88_v27, %v75_v14 }
   0xd   :  { %v144_v44 = vrot.slane %v124_v28, %v317_v16  ;;  %v148_v45 = vrot.slane %v128_v29, %v317_v16  ;;  %v152_v46 = vrot.slane %v132_v30, %v317_v16  ;;  %v156_v47 = vrot.slane %v136_v31, %v317_v16 }
   0xe   :  { %v192_v49 = vrot.slane %v172_v33, %v319_v18  ;;  %v196_v50 = vrot.slane %v176_v34, %v319_v18  ;;  %v200_v51 = vrot.slane %v180_v35, %v319_v18  ;;  %v184_v52 = vrot.slane %v13_v13, %v175_v19 }
  0x10   :  { %v204_v2 = vrot.slane %v184_v52, %v319_v18 }
  0x74   :  { %v214_v7 = vpop.permute.xlu0 %213 }
  0x75   :  { %v216_v8 = vadd.f32 %v214_v7, %v11_v0 }
  0x77   :  { %218 = vrot.lane.b32.xlu1 %v216_v8, %s292_s0 }
  0x81   :  { %v63_v32 = vpop.permute.xlu1 %62 }
  0x85   :  { %v17_v48 = vpop.permute.xlu0 %16 }
  0x86   :  { %v71_v53 = vpop.permute.xlu1 %70  ;;  %v57_v54 = vmul.f32 %v44_v36, %v17_v48  ;;  %v58_v55 = vmul.f32 %v48_v37, %v17_v48  ;;  %v59_v56 = vmul.f32 %v52_v38, %v17_v48  ;;  %v60_v57 = vmul.f32 %v56_v39, %v17_v48 }
  0x87   :  { %v109_v58 = vmul.f32 %v96_v40, %v71_v53  ;;  %v110_v59 = vmul.f32 %v100_v41, %v71_v53  ;;  %v111_v60 = vmul.f32 %v104_v42, %v71_v53  ;;  %v112_v61 = vmul.f32 %v108_v43, %v71_v53 }
  0x88   :  { %v65_v62 = vadd.f32 %v63_v32, %v57_v54  ;;  %v66_v63 = vadd.f32 %v63_v32, %v58_v55  ;;  %v67_v0 = vadd.f32 %v63_v32, %v59_v56  ;;  %v68_v1 = vadd.f32 %v63_v32, %v60_v57 }
  0x8a   :  { %v113_v3 = vadd.f32 %v109_v58, %v65_v62  ;;  %v114_v4 = vadd.f32 %v110_v59, %v66_v63  ;;  %v167_v5 = vpop.permute.xlu0 %166  ;;  %v115_v6 = vadd.f32 %v111_v60, %v67_v0  ;;  %v116_v7 = vadd.f32 %v112_v61, %v68_v1 }
  0x8b   :  { %v119_v8 = vpop.permute.xlu1 %118  ;;  %v205_v9 = vmul.f32 %v192_v49, %v167_v5  ;;  %v206_v10 = vmul.f32 %v196_v50, %v167_v5  ;;  %v207_v11 = vmul.f32 %v200_v51, %v167_v5  ;;  %v208_v16 = vmul.f32 %v204_v2, %v167_v5 }
  0x8c   :  { %v157_v12 = vmul.f32 %v144_v44, %v119_v8  ;;  %v158_v13 = vmul.f32 %v148_v45, %v119_v8  ;;  %v159_v14 = vmul.f32 %v152_v46, %v119_v8  ;;  %v160_v15 = vmul.f32 %v156_v47, %v119_v8 }
  0x8e   :  { %v161_v17 = vadd.f32 %v157_v12, %v113_v3  ;;  %v162_v19 = vadd.f32 %v158_v13, %v114_v4  ;;  %v163_v20 = vadd.f32 %v159_v14, %v115_v6  ;;  %v164_v21 = vadd.f32 %v160_v15, %v116_v7 }
  0x90   :  { %v209_v22 = vadd.f32 %v205_v9, %v161_v17  ;;  %v210_v18 = vadd.f32 %v206_v10, %v162_v19  ;;  %v211_v23 = vadd.f32 %v207_v11, %v163_v20  ;;  %v212_v24 = vadd.f32 %v208_v16, %v164_v21 }
  0x92   :  { %v232_v25 = vadd.f32 %v210_v18, %v209_v22 }
  0x94   :  { %v233_v26 = vadd.f32 %v232_v25, %v211_v23 }
  0x96   :  { %v234_v27 = vadd.f32 %v233_v26, %v212_v24 }
  0x98   :  { %235 = vadd.xlane.f32.xlu0 %v234_v27 }
  0xe9   :  { %v219_v28 = vpop.permute.xlu1 %218 }
  0xea   :  { %v222_v29 = vsel %vm221_vm0, %v219_v28, 0.0 }
  0xeb   :  { %223 = vadd.xlane.f32.xlu1 %v222_v29 }
 0x125   :  { %v236_v30 = vpop.xlane.xlu0 %235 }
 0x126   :  { %v237_v31 = vrot.slane %v236_v30, 4 }
 0x128   :  { %v238_v32 = vadd.f32 %v237_v31, %v236_v30 }
 0x12a   :  { %v239_v33 = vrot.slane %v238_v32, 2 }
 0x12c   :  { %v240_v37 = vadd.f32 %v239_v33, %v238_v32 }
 0x12e   :  { %v241_v40 = vrot.slane %v240_v37, 1 }
 0x130   :  { %v242_v43 = vadd.f32 %v241_v40, %v240_v37 }
 0x178   :  { %v224_v34 = vpop.xlane.xlu1 %223 }
 0x179   :  { %v225_v35 = vrot.slane %v224_v34, 4 }
 0x17b   :  { %v226_v36 = vadd.f32 %v225_v35, %v224_v34 }
 0x17d   :  { %v227_v38 = vrot.slane %v226_v36, 2 }
 0x17f   :  { %v228_v39 = vadd.f32 %v227_v38, %v226_v36 }
 0x181   :  { %v229_v41 = vrot.slane %v228_v39, 1 }
 0x183   :  { %v230_v42 = vadd.f32 %v229_v41, %v228_v39 }
 0x185   :  { %270 = vpush %v230_v42 }
 0x186   :  { %272 = vpush %v242_v43 }
 0x1b6   :  { %s271_s1 = spop %270 }
 0x1b7   :  { %s244_s16 = smul.f32 112.0, %s271_s1  ;;  %s273_s17 = spop %272 }
 0x1b9   :  { %s245_s18 = ssub.f32 %s273_s17, %s244_s16 }
 0x1bb   :  { %s246_s19 = smul.f32 0.0003125, %s245_s18 }
 0x1bd   :  { %s247_s20 = sadd.f32 3.0, %s246_s19  ;;  %v248_v44 = vstv %s246_s19 }
 0x1be   :  { %v249_v45 = vmax.f32 %v248_v44, %v209_v22  ;;  %v250_v46 = vmax.f32 %v248_v44, %v210_v18  ;;  %v251_v47 = vmax.f32 %v248_v44, %v211_v23  ;;  %v252_v48 = vmax.f32 %v248_v44, %v212_v24 }
 0x1bf   :  { %v253_v49 = vstv %s247_s20 }
 0x1c0   :  { %v254_v50 = vmin.f32 %v253_v49, %v249_v45  ;;  %v255_v51 = vmin.f32 %v253_v49, %v250_v46  ;;  %v256_v52 = vmin.f32 %v253_v49, %v251_v47  ;;  %v257_v53 = vmin.f32 %v253_v49, %v252_v48 }
 0x1c2   :  { %v258_v54 = vmul.f32 0.33333334, %v254_v50  ;;  %v259_v55 = vmul.f32 0.33333334, %v255_v51  ;;  %v260_v56 = vmul.f32 0.33333334, %v256_v52 }
 0x1c3   :  { %v261_v57 = vmul.f32 0.33333334, %v257_v53 }
 0x1c4   :  { %262 = vst [vmem:[%s347_s2] sm:$0xff] %v258_v54  ;;  %263 = vst [vmem:[%s347_s2 + $0x8] sm:$0xff] %v259_v55 }
 0x1c5   :  { %264 = vst [vmem:[%s347_s2 + $0x10] sm:$0xff] %v260_v56  ;;  %265 = vst [vmem:[%s347_s2 + $0x18] sm:$0xff] %v261_v57 }

</bundles_post_ra>
